<compile_context>
chip_gen: v7x
topology: tpu7x:2x2x1
jax: 0.10.0
libtpu: 0.0.40
codegen_flags: <defaults>
</compile_context>

<pallas_src>
import jax
import jax.numpy as jnp
from jax.experimental import pallas as pl
from jax.experimental.pallas import tpu as pltpu


def _make_kernel(TB: int, S: int, H: int, CP: int):
    """Kernel for one batch block of TB rows.

    Ref shapes per grid step:
      h1..h4 : (1, TB, S, H)  -- hidden layers [-1], [-2], [-3], [-4]
      W_w    : (4H, 4H) bf16  -- AttentionHead.W_w_b_w weight (x @ W + b form)
      b_w    : (1, 4H)  f32
      u_w    : (1, 4H)  f32   -- AttentionHead.u_w weight, as a row vector
      u_b    : (1, 1)   f32
      fc_w   : (8H, CP) f32   -- final Linear weight, classes padded to CP
      fc_b   : (1, CP)  f32   -- bias; pad columns are -1e30
      out    : (TB, CP) f32   -- softmax probabilities (pad columns are 0)
    """
    H4 = 4 * H

    def kernel(h1_ref, h2_ref, h3_ref, h4_ref, Ww_ref, bw_ref, uw_ref, ub_ref,
               fcw_ref, fcb_ref, out_ref):
        # Per-layer feature blocks, kept separate (no concat materialized).
        layers = [h1_ref[0], h2_ref[0], h3_ref[0], h4_ref[0]]   # (TB, S, H) f32

        # ---- u = tanh(concat(layers) @ W_w + b_w) via per-layer row blocks of
        # W_w.  bf16 matmul inputs, f32 accumulation.
        acc = jnp.zeros((TB * S, H4), dtype=jnp.float32)
        for k in range(4):
            lk = layers[k].reshape(TB * S, H).astype(jnp.bfloat16)
            acc = acc + jnp.dot(lk, Ww_ref[k * H:(k + 1) * H, :],
                                preferred_element_type=jnp.float32)
        u = jnp.tanh(acc + bw_ref[...])                          # (TB*S, 4H) f32

        # ---- attention logits: VPU multiply + lane reduction (no N=1 matmul).
        att = jnp.sum(u * uw_ref[...], axis=-1, keepdims=True) + ub_ref[...]
        att = att.reshape(TB, S, 1)                              # (TB, S, 1)

        # softmax over the sequence dim (torch.softmax(att, dim=1))
        att = att - jnp.max(att, axis=1, keepdims=True)
        e = jnp.exp(att)
        att_score = e / jnp.sum(e, axis=1, keepdims=True)        # (TB, S, 1)
        att_b = jnp.broadcast_to(att_score, (TB, S, H))          # hoisted bcast

        # ---- head pooling + cls pooling, fed straight into the matching fc
        # row blocks (no concat of [head, cls] needed).
        logits = jnp.zeros((TB, CP), dtype=jnp.float32)
        for k in range(4):
            lk3 = layers[k]                                      # (TB, S, H) f32
            head_k = jnp.sum(att_b * lk3, axis=1)                # (TB, H)
            cls_k = lk3[:, 0, :]                                 # (TB, H)
            logits = logits + jnp.dot(
                head_k, fcw_ref[k * H:(k + 1) * H, :],
                preferred_element_type=jnp.float32)
            logits = logits + jnp.dot(
                cls_k, fcw_ref[H4 + k * H:H4 + (k + 1) * H, :],
                preferred_element_type=jnp.float32)
        logits = logits + fcb_ref[...]                           # (TB, CP)

        # ---- softmax over (padded) classes; pad columns have -1e30 bias so
        # they contribute exp(.) == 0.
        logits = logits - jnp.max(logits, axis=-1, keepdims=True)
        p = jnp.exp(logits)
        out_ref[...] = (p / jnp.sum(p, axis=-1, keepdims=True)).astype(out_ref.dtype)

    return kernel


def bert_last_four_att_forward(hidden_states, params, *, tb: int = 32):
    """hidden_states: (L, B, S, H) float32; returns (B, num_class) probs."""
    L, B, S, H = hidden_states.shape
    assert L >= 4
    H4 = 4 * H
    C = params["fc_w"].shape[1]
    CP = ((C + 127) // 128) * 128            # lane-dense padded class dim

    TB = min(tb, B)                          # batch rows per grid step
    nb = pl.cdiv(B, TB)

    # Parameter massaging (tiny, one-shot): bf16 weight for the MXU matmul,
    # u_w as a row vector, class-padded fc weight/bias.
    Ww_bf = params["W_w"].astype(jnp.bfloat16)                    # (4H, 4H)
    bw = params["b_w"].reshape(1, H4).astype(jnp.float32)         # (1, 4H)
    uw_row = params["u_w"].reshape(1, H4).astype(jnp.float32)     # (1, 4H)
    ub = params["u_b"].reshape(1, 1).astype(jnp.float32)          # (1, 1)
    fcw_p = jnp.pad(params["fc_w"], ((0, 0), (0, CP - C)))        # (8H, CP)
    fcb_p = jnp.pad(params["fc_b"].reshape(1, -1), ((0, 0), (0, CP - C)),
                    constant_values=-1e30)                        # (1, CP)

    kernel = _make_kernel(TB, S, H, CP)

    def layer_spec(layer_idx):
        # Reads layer `layer_idx` of the original (L, B, S, H) array directly;
        # no wrapper-side slice/concatenate -> no extra HBM traffic.
        return pl.BlockSpec((1, TB, S, H), lambda b, li=layer_idx: (li, b, 0, 0))

    out_p = pl.pallas_call(
        kernel,
        out_shape=jax.ShapeDtypeStruct((nb * TB, CP), jnp.float32),
        grid_spec=pltpu.PrefetchScalarGridSpec(
            num_scalar_prefetch=0,
            grid=(nb,),
            in_specs=[
                layer_spec(L - 1),                               # hidden[-1]
                layer_spec(L - 2),                               # hidden[-2]
                layer_spec(L - 3),                               # hidden[-3]
                layer_spec(L - 4),                               # hidden[-4]
                pl.BlockSpec((H4, H4), lambda b: (0, 0)),        # W_w (bf16)
                pl.BlockSpec((1, H4), lambda b: (0, 0)),         # b_w
                pl.BlockSpec((1, H4), lambda b: (0, 0)),         # u_w row
                pl.BlockSpec((1, 1), lambda b: (0, 0)),          # u_b
                pl.BlockSpec((2 * H4, CP), lambda b: (0, 0)),    # fc_w (padded)
                pl.BlockSpec((1, CP), lambda b: (0, 0)),         # fc_b (padded)
            ],
            out_specs=pl.BlockSpec((TB, CP), lambda b: (b, 0)),
        ),
        compiler_params=pltpu.CompilerParams(
            dimension_semantics=("parallel",)
        ),
    )(hidden_states, hidden_states, hidden_states, hidden_states,
      Ww_bf, bw, uw_row, ub, fcw_p, fcb_p)

    return out_p[:B, :C]


def reference_forward(hidden_states, params):
    """Pure-JAX reference matching the PyTorch module (eval mode, no labels)."""
    concat_pool = jnp.concatenate(
        [hidden_states[-1], hidden_states[-2], hidden_states[-3], hidden_states[-4]],
        axis=-1,
    )  # (B, S, 4H)
    cls_pooling = concat_pool[:, 0]                                  # (B, 4H)
    u = jnp.tanh(concat_pool @ params["W_w"] + params["b_w"])        # (B, S, 4H)
    att = u @ params["u_w"] + params["u_b"]                          # (B, S, 1)
    att_score = jax.nn.softmax(att, axis=1)
    head = jnp.sum(att_score * concat_pool, axis=1)                  # (B, 4H)
    out = jnp.concatenate([head, cls_pooling], axis=-1)              # (B, 8H)
    out = out @ params["fc_w"] + params["fc_b"]
    return jax.nn.softmax(out, axis=1)


if __name__ == "__main__":
    # Small shapes consistent with the module: hidden_size=32 -> 4H=128, 8H=256
    L, B, S, H, C = 5, 2, 8, 32, 4
    H4 = 4 * H

    key = jax.random.PRNGKey(0)
    k_hs, k_w1, k_b1, k_w2, k_b2, k_w3, k_b3 = jax.random.split(key, 7)

    hidden_states = jax.random.normal(k_hs, (L, B, S, H), dtype=jnp.float32)

    # Deterministic parameter init (shapes from AttentionHead(4H) / Linear(8H, C)).
    # Weights stored as (in_features, out_features); y = x @ W + b.
    params = {
        "W_w": 0.05 * jax.random.normal(k_w1, (H4, H4), dtype=jnp.float32),
        "b_w": 0.05 * jax.random.normal(k_b1, (1, H4), dtype=jnp.float32),
        "u_w": 0.05 * jax.random.normal(k_w2, (H4, 1), dtype=jnp.float32),
        "u_b": 0.05 * jax.random.normal(k_b2, (1, 1), dtype=jnp.float32),
        "fc_w": 0.05 * jax.random.normal(k_w3, (2 * H4, C), dtype=jnp.float32),
        "fc_b": 0.05 * jax.random.normal(k_b3, (1, C), dtype=jnp.float32),
    }

    out = bert_last_four_att_forward(hidden_states, params)
    out = jax.block_until_ready(out)

    ref = reference_forward(hidden_states, params)
    assert out.shape == (B, C)
    # bf16 MXU inputs (f32 accumulation) -> loosened tolerance vs f32 reference.
    assert jnp.allclose(out, ref, atol=1e-2, rtol=1e-2), (out, ref)

    print("KERNEL_OK")
</pallas_src>

<mosaic_0001>
module attributes {stable_mosaic.version = 11 : i64} {
  func.func @kernel(%arg0: i32, %arg1: memref<1x2x8x32xf32, #tpu.memory_space<vmem>>, %arg2: memref<1x2x8x32xf32, #tpu.memory_space<vmem>>, %arg3: memref<1x2x8x32xf32, #tpu.memory_space<vmem>>, %arg4: memref<1x2x8x32xf32, #tpu.memory_space<vmem>>, %arg5: memref<128x128xbf16, #tpu.memory_space<vmem>>, %arg6: memref<1x128xf32, #tpu.memory_space<vmem>>, %arg7: memref<1x128xf32, #tpu.memory_space<vmem>>, %arg8: memref<1x1xf32, #tpu.memory_space<vmem>>, %arg9: memref<256x128xf32, #tpu.memory_space<vmem>>, %arg10: memref<1x128xf32, #tpu.memory_space<vmem>>, %arg11: memref<2x128xf32, #tpu.memory_space<vmem>>) attributes {dimension_semantics = [#tpu.dimension_semantics<parallel>], iteration_bounds = array<i64: 1>, scalar_prefetch = 0 : i64, scratch_operands = 0 : i64, tpu.core_type = #tpu.core_type<tc>, window_params = [{transform_indices = @transform_0, window_bounds = array<i64: 1, 2, 8, 32>}, {transform_indices = @transform_1, window_bounds = array<i64: 1, 2, 8, 32>}, {transform_indices = @transform_2, window_bounds = array<i64: 1, 2, 8, 32>}, {transform_indices = @transform_3, window_bounds = array<i64: 1, 2, 8, 32>}, {pipeline_mode = #tpu.pipeline_mode<synchronous>, transform_indices = @transform_4, window_bounds = array<i64: 128, 128>}, {pipeline_mode = #tpu.pipeline_mode<synchronous>, transform_indices = @transform_5, window_bounds = array<i64: 1, 128>}, {pipeline_mode = #tpu.pipeline_mode<synchronous>, transform_indices = @transform_6, window_bounds = array<i64: 1, 128>}, {pipeline_mode = #tpu.pipeline_mode<synchronous>, transform_indices = @transform_7, window_bounds = array<i64: 1, 1>}, {pipeline_mode = #tpu.pipeline_mode<synchronous>, transform_indices = @transform_8, window_bounds = array<i64: 256, 128>}, {pipeline_mode = #tpu.pipeline_mode<synchronous>, transform_indices = @transform_9, window_bounds = array<i64: 1, 128>}, {transform_indices = @transform_10, window_bounds = array<i64: 2, 128>}]} {
    %c0 = arith.constant 0 : index
    %c0_0 = arith.constant 0 : index
    %c0_1 = arith.constant 0 : index
    %c0_2 = arith.constant 0 : index
    %0 = vector.load %arg1[%c0, %c0_0, %c0_1, %c0_2] : memref<1x2x8x32xf32, #tpu.memory_space<vmem>>, vector<1x2x8x32xf32>
    %1 = vector.shape_cast %0 : vector<1x2x8x32xf32> to vector<2x8x32xf32>
    %c0_3 = arith.constant 0 : index
    %c0_4 = arith.constant 0 : index
    %c0_5 = arith.constant 0 : index
    %c0_6 = arith.constant 0 : index
    %2 = vector.load %arg2[%c0_3, %c0_4, %c0_5, %c0_6] : memref<1x2x8x32xf32, #tpu.memory_space<vmem>>, vector<1x2x8x32xf32>
    %3 = vector.shape_cast %2 : vector<1x2x8x32xf32> to vector<2x8x32xf32>
    %c0_7 = arith.constant 0 : index
    %c0_8 = arith.constant 0 : index
    %c0_9 = arith.constant 0 : index
    %c0_10 = arith.constant 0 : index
    %4 = vector.load %arg3[%c0_7, %c0_8, %c0_9, %c0_10] : memref<1x2x8x32xf32, #tpu.memory_space<vmem>>, vector<1x2x8x32xf32>
    %5 = vector.shape_cast %4 : vector<1x2x8x32xf32> to vector<2x8x32xf32>
    %c0_11 = arith.constant 0 : index
    %c0_12 = arith.constant 0 : index
    %c0_13 = arith.constant 0 : index
    %c0_14 = arith.constant 0 : index
    %6 = vector.load %arg4[%c0_11, %c0_12, %c0_13, %c0_14] : memref<1x2x8x32xf32, #tpu.memory_space<vmem>>, vector<1x2x8x32xf32>
    %7 = vector.shape_cast %6 : vector<1x2x8x32xf32> to vector<2x8x32xf32>
    %cst = arith.constant 0.000000e+00 : f32
    %8 = vector.broadcast %cst : f32 to vector<16x128xf32>
    %9 = vector.shape_cast %1 : vector<2x8x32xf32> to vector<16x32xf32>
    %10 = arith.truncf %9 : vector<16x32xf32> to vector<16x32xbf16>
    %c0_15 = arith.constant 0 : index
    %c0_16 = arith.constant 0 : index
    %11 = vector.load %arg5[%c0_15, %c0_16] : memref<128x128xbf16, #tpu.memory_space<vmem>>, vector<32x128xbf16>
    %cst_17 = arith.constant dense<0.000000e+00> : vector<16x128xf32>
    %12 = tpu.matmul %10, %11, %cst_17 {dimension_numbers = #tpu.dot_dimension_numbers<[1], [0], [0], [1], [0, 0, 1, 1], [], []>} : vector<16x32xbf16>, vector<32x128xbf16>, vector<16x128xf32> -> vector<16x128xf32>
    %13 = arith.addf %8, %12 : vector<16x128xf32>
    %14 = vector.shape_cast %3 : vector<2x8x32xf32> to vector<16x32xf32>
    %15 = arith.truncf %14 : vector<16x32xf32> to vector<16x32xbf16>
    %c32 = arith.constant 32 : index
    %c0_18 = arith.constant 0 : index
    %16 = vector.load %arg5[%c32, %c0_18] : memref<128x128xbf16, #tpu.memory_space<vmem>>, vector<32x128xbf16>
    %cst_19 = arith.constant dense<0.000000e+00> : vector<16x128xf32>
    %17 = tpu.matmul %15, %16, %cst_19 {dimension_numbers = #tpu.dot_dimension_numbers<[1], [0], [0], [1], [0, 0, 1, 1], [], []>} : vector<16x32xbf16>, vector<32x128xbf16>, vector<16x128xf32> -> vector<16x128xf32>
    %18 = arith.addf %13, %17 : vector<16x128xf32>
    %19 = vector.shape_cast %5 : vector<2x8x32xf32> to vector<16x32xf32>
    %20 = arith.truncf %19 : vector<16x32xf32> to vector<16x32xbf16>
    %c64 = arith.constant 64 : index
    %c0_20 = arith.constant 0 : index
    %21 = vector.load %arg5[%c64, %c0_20] : memref<128x128xbf16, #tpu.memory_space<vmem>>, vector<32x128xbf16>
    %cst_21 = arith.constant dense<0.000000e+00> : vector<16x128xf32>
    %22 = tpu.matmul %20, %21, %cst_21 {dimension_numbers = #tpu.dot_dimension_numbers<[1], [0], [0], [1], [0, 0, 1, 1], [], []>} : vector<16x32xbf16>, vector<32x128xbf16>, vector<16x128xf32> -> vector<16x128xf32>
    %23 = arith.addf %18, %22 : vector<16x128xf32>
    %24 = vector.shape_cast %7 : vector<2x8x32xf32> to vector<16x32xf32>
    %25 = arith.truncf %24 : vector<16x32xf32> to vector<16x32xbf16>
    %c96 = arith.constant 96 : index
    %c0_22 = arith.constant 0 : index
    %26 = vector.load %arg5[%c96, %c0_22] : memref<128x128xbf16, #tpu.memory_space<vmem>>, vector<32x128xbf16>
    %cst_23 = arith.constant dense<0.000000e+00> : vector<16x128xf32>
    %27 = tpu.matmul %25, %26, %cst_23 {dimension_numbers = #tpu.dot_dimension_numbers<[1], [0], [0], [1], [0, 0, 1, 1], [], []>} : vector<16x32xbf16>, vector<32x128xbf16>, vector<16x128xf32> -> vector<16x128xf32>
    %28 = arith.addf %23, %27 : vector<16x128xf32>
    %c0_24 = arith.constant 0 : index
    %c0_25 = arith.constant 0 : index
    %29 = vector.load %arg6[%c0_24, %c0_25] : memref<1x128xf32, #tpu.memory_space<vmem>>, vector<1x128xf32>
    %30 = vector.broadcast %29 : vector<1x128xf32> to vector<16x128xf32>
    %31 = arith.addf %28, %30 : vector<16x128xf32>
    %32 = math.tanh %31 : vector<16x128xf32>
    %c0_26 = arith.constant 0 : index
    %c0_27 = arith.constant 0 : index
    %33 = vector.load %arg7[%c0_26, %c0_27] : memref<1x128xf32, #tpu.memory_space<vmem>>, vector<1x128xf32>
    %34 = vector.broadcast %33 : vector<1x128xf32> to vector<16x128xf32>
    %35 = arith.mulf %32, %34 : vector<16x128xf32>
    %cst_28 = arith.constant dense<0.000000e+00> : vector<16xf32>
    %36 = vector.multi_reduction <add>, %35, %cst_28 [1] : vector<16x128xf32> to vector<16xf32>
    %37 = vector.shape_cast %36 : vector<16xf32> to vector<16x1xf32>
    %c0_29 = arith.constant 0 : index
    %c0_30 = arith.constant 0 : index
    %38 = vector.load %arg8[%c0_29, %c0_30] : memref<1x1xf32, #tpu.memory_space<vmem>>, vector<1x1xf32>
    %39 = vector.broadcast %38 : vector<1x1xf32> to vector<16x1xf32>
    %40 = arith.addf %37, %39 : vector<16x1xf32>
    %41 = vector.shape_cast %40 : vector<16x1xf32> to vector<2x8x1xf32>
    %cst_31 = arith.constant dense<0xFF800000> : vector<2x1xf32>
    %42 = vector.multi_reduction <maximumf>, %41, %cst_31 [1] : vector<2x8x1xf32> to vector<2x1xf32>
    %43 = vector.shape_cast %42 : vector<2x1xf32> to vector<2x1x1xf32>
    %44 = vector.broadcast %43 : vector<2x1x1xf32> to vector<2x8x1xf32>
    %45 = arith.subf %41, %44 : vector<2x8x1xf32>
    %46 = math.exp %45 : vector<2x8x1xf32>
    %cst_32 = arith.constant dense<0.000000e+00> : vector<2x1xf32>
    %47 = vector.multi_reduction <add>, %46, %cst_32 [1] : vector<2x8x1xf32> to vector<2x1xf32>
    %48 = vector.shape_cast %47 : vector<2x1xf32> to vector<2x1x1xf32>
    %49 = vector.broadcast %48 : vector<2x1x1xf32> to vector<2x8x1xf32>
    %50 = arith.divf %46, %49 : vector<2x8x1xf32>
    %51 = vector.shape_cast %50 : vector<2x8x1xf32> to vector<2x8x1xf32>
    %52 = vector.broadcast %51 : vector<2x8x1xf32> to vector<2x8x32xf32>
    %cst_33 = arith.constant 0.000000e+00 : f32
    %53 = vector.broadcast %cst_33 : f32 to vector<2x128xf32>
    %54 = arith.mulf %52, %1 : vector<2x8x32xf32>
    %cst_34 = arith.constant dense<0.000000e+00> : vector<2x32xf32>
    %55 = vector.multi_reduction <add>, %54, %cst_34 [1] : vector<2x8x32xf32> to vector<2x32xf32>
    %56 = vector.extract_strided_slice %1 {offsets = [0, 0, 0], sizes = [2, 1, 32], strides = [1, 1, 1]} : vector<2x8x32xf32> to vector<2x1x32xf32>
    %57 = vector.shape_cast %56 : vector<2x1x32xf32> to vector<2x32xf32>
    %c0_35 = arith.constant 0 : index
    %c0_36 = arith.constant 0 : index
    %58 = vector.load %arg9[%c0_35, %c0_36] : memref<256x128xf32, #tpu.memory_space<vmem>>, vector<32x128xf32>
    %cst_37 = arith.constant dense<0.000000e+00> : vector<2x128xf32>
    %59 = tpu.matmul %55, %58, %cst_37 {dimension_numbers = #tpu.dot_dimension_numbers<[1], [0], [0], [1], [0, 0, 1, 1], [], []>} : vector<2x32xf32>, vector<32x128xf32>, vector<2x128xf32> -> vector<2x128xf32>
    %60 = arith.addf %53, %59 : vector<2x128xf32>
    %c128 = arith.constant 128 : index
    %c0_38 = arith.constant 0 : index
    %61 = vector.load %arg9[%c128, %c0_38] : memref<256x128xf32, #tpu.memory_space<vmem>>, vector<32x128xf32>
    %cst_39 = arith.constant dense<0.000000e+00> : vector<2x128xf32>
    %62 = tpu.matmul %57, %61, %cst_39 {dimension_numbers = #tpu.dot_dimension_numbers<[1], [0], [0], [1], [0, 0, 1, 1], [], []>} : vector<2x32xf32>, vector<32x128xf32>, vector<2x128xf32> -> vector<2x128xf32>
    %63 = arith.addf %60, %62 : vector<2x128xf32>
    %64 = arith.mulf %52, %3 : vector<2x8x32xf32>
    %cst_40 = arith.constant dense<0.000000e+00> : vector<2x32xf32>
    %65 = vector.multi_reduction <add>, %64, %cst_40 [1] : vector<2x8x32xf32> to vector<2x32xf32>
    %66 = vector.extract_strided_slice %3 {offsets = [0, 0, 0], sizes = [2, 1, 32], strides = [1, 1, 1]} : vector<2x8x32xf32> to vector<2x1x32xf32>
    %67 = vector.shape_cast %66 : vector<2x1x32xf32> to vector<2x32xf32>
    %c32_41 = arith.constant 32 : index
    %c0_42 = arith.constant 0 : index
    %68 = vector.load %arg9[%c32_41, %c0_42] : memref<256x128xf32, #tpu.memory_space<vmem>>, vector<32x128xf32>
    %cst_43 = arith.constant dense<0.000000e+00> : vector<2x128xf32>
    %69 = tpu.matmul %65, %68, %cst_43 {dimension_numbers = #tpu.dot_dimension_numbers<[1], [0], [0], [1], [0, 0, 1, 1], [], []>} : vector<2x32xf32>, vector<32x128xf32>, vector<2x128xf32> -> vector<2x128xf32>
    %70 = arith.addf %63, %69 : vector<2x128xf32>
    %c160 = arith.constant 160 : index
    %c0_44 = arith.constant 0 : index
    %71 = vector.load %arg9[%c160, %c0_44] : memref<256x128xf32, #tpu.memory_space<vmem>>, vector<32x128xf32>
    %cst_45 = arith.constant dense<0.000000e+00> : vector<2x128xf32>
    %72 = tpu.matmul %67, %71, %cst_45 {dimension_numbers = #tpu.dot_dimension_numbers<[1], [0], [0], [1], [0, 0, 1, 1], [], []>} : vector<2x32xf32>, vector<32x128xf32>, vector<2x128xf32> -> vector<2x128xf32>
    %73 = arith.addf %70, %72 : vector<2x128xf32>
    %74 = arith.mulf %52, %5 : vector<2x8x32xf32>
    %cst_46 = arith.constant dense<0.000000e+00> : vector<2x32xf32>
    %75 = vector.multi_reduction <add>, %74, %cst_46 [1] : vector<2x8x32xf32> to vector<2x32xf32>
    %76 = vector.extract_strided_slice %5 {offsets = [0, 0, 0], sizes = [2, 1, 32], strides = [1, 1, 1]} : vector<2x8x32xf32> to vector<2x1x32xf32>
    %77 = vector.shape_cast %76 : vector<2x1x32xf32> to vector<2x32xf32>
    %c64_47 = arith.constant 64 : index
    %c0_48 = arith.constant 0 : index
    %78 = vector.load %arg9[%c64_47, %c0_48] : memref<256x128xf32, #tpu.memory_space<vmem>>, vector<32x128xf32>
    %cst_49 = arith.constant dense<0.000000e+00> : vector<2x128xf32>
    %79 = tpu.matmul %75, %78, %cst_49 {dimension_numbers = #tpu.dot_dimension_numbers<[1], [0], [0], [1], [0, 0, 1, 1], [], []>} : vector<2x32xf32>, vector<32x128xf32>, vector<2x128xf32> -> vector<2x128xf32>
    %80 = arith.addf %73, %79 : vector<2x128xf32>
    %c192 = arith.constant 192 : index
    %c0_50 = arith.constant 0 : index
    %81 = vector.load %arg9[%c192, %c0_50] : memref<256x128xf32, #tpu.memory_space<vmem>>, vector<32x128xf32>
    %cst_51 = arith.constant dense<0.000000e+00> : vector<2x128xf32>
    %82 = tpu.matmul %77, %81, %cst_51 {dimension_numbers = #tpu.dot_dimension_numbers<[1], [0], [0], [1], [0, 0, 1, 1], [], []>} : vector<2x32xf32>, vector<32x128xf32>, vector<2x128xf32> -> vector<2x128xf32>
    %83 = arith.addf %80, %82 : vector<2x128xf32>
    %84 = arith.mulf %52, %7 : vector<2x8x32xf32>
    %cst_52 = arith.constant dense<0.000000e+00> : vector<2x32xf32>
    %85 = vector.multi_reduction <add>, %84, %cst_52 [1] : vector<2x8x32xf32> to vector<2x32xf32>
    %86 = vector.extract_strided_slice %7 {offsets = [0, 0, 0], sizes = [2, 1, 32], strides = [1, 1, 1]} : vector<2x8x32xf32> to vector<2x1x32xf32>
    %87 = vector.shape_cast %86 : vector<2x1x32xf32> to vector<2x32xf32>
    %c96_53 = arith.constant 96 : index
    %c0_54 = arith.constant 0 : index
    %88 = vector.load %arg9[%c96_53, %c0_54] : memref<256x128xf32, #tpu.memory_space<vmem>>, vector<32x128xf32>
    %cst_55 = arith.constant dense<0.000000e+00> : vector<2x128xf32>
    %89 = tpu.matmul %85, %88, %cst_55 {dimension_numbers = #tpu.dot_dimension_numbers<[1], [0], [0], [1], [0, 0, 1, 1], [], []>} : vector<2x32xf32>, vector<32x128xf32>, vector<2x128xf32> -> vector<2x128xf32>
    %90 = arith.addf %83, %89 : vector<2x128xf32>
    %c224 = arith.constant 224 : index
    %c0_56 = arith.constant 0 : index
    %91 = vector.load %arg9[%c224, %c0_56] : memref<256x128xf32, #tpu.memory_space<vmem>>, vector<32x128xf32>
    %cst_57 = arith.constant dense<0.000000e+00> : vector<2x128xf32>
    %92 = tpu.matmul %87, %91, %cst_57 {dimension_numbers = #tpu.dot_dimension_numbers<[1], [0], [0], [1], [0, 0, 1, 1], [], []>} : vector<2x32xf32>, vector<32x128xf32>, vector<2x128xf32> -> vector<2x128xf32>
    %93 = arith.addf %90, %92 : vector<2x128xf32>
    %c0_58 = arith.constant 0 : index
    %c0_59 = arith.constant 0 : index
    %94 = vector.load %arg10[%c0_58, %c0_59] : memref<1x128xf32, #tpu.memory_space<vmem>>, vector<1x128xf32>
    %95 = vector.broadcast %94 : vector<1x128xf32> to vector<2x128xf32>
    %96 = arith.addf %93, %95 : vector<2x128xf32>
    %cst_60 = arith.constant dense<0xFF800000> : vector<2xf32>
    %97 = vector.multi_reduction <maximumf>, %96, %cst_60 [1] : vector<2x128xf32> to vector<2xf32>
    %98 = vector.shape_cast %97 : vector<2xf32> to vector<2x1xf32>
    %99 = vector.broadcast %98 : vector<2x1xf32> to vector<2x128xf32>
    %100 = arith.subf %96, %99 : vector<2x128xf32>
    %101 = math.exp %100 : vector<2x128xf32>
    %cst_61 = arith.constant dense<0.000000e+00> : vector<2xf32>
    %102 = vector.multi_reduction <add>, %101, %cst_61 [1] : vector<2x128xf32> to vector<2xf32>
    %103 = vector.shape_cast %102 : vector<2xf32> to vector<2x1xf32>
    %104 = vector.broadcast %103 : vector<2x1xf32> to vector<2x128xf32>
    %105 = arith.divf %101, %104 : vector<2x128xf32>
    %c0_62 = arith.constant 0 : index
    %c0_63 = arith.constant 0 : index
    %106 = vector.load %arg11[%c0_62, %c0_63] : memref<2x128xf32, #tpu.memory_space<vmem>>, vector<2x128xf32>
    tpu.vector_store %arg11[%c0_62, %c0_63], %105 {strides = array<i32>} : memref<2x128xf32, #tpu.memory_space<vmem>>, vector<2x128xf32>,
    return
  }
  func.func @transform_0(%arg0: i32) -> (i32, i32, i32, i32) {
    %c4_i32 = arith.constant 4 : i32
    %c0_i32 = arith.constant 0 : i32
    %c0_i32_0 = arith.constant 0 : i32
    %c0_i32_1 = arith.constant 0 : i32
    return %c4_i32, %arg0, %c0_i32, %c0_i32_0 : i32, i32, i32, i32
  }
  func.func @transform_1(%arg0: i32) -> (i32, i32, i32, i32) {
    %c3_i32 = arith.constant 3 : i32
    %c0_i32 = arith.constant 0 : i32
    %c0_i32_0 = arith.constant 0 : i32
    %c0_i32_1 = arith.constant 0 : i32
    return %c3_i32, %arg0, %c0_i32, %c0_i32_0 : i32, i32, i32, i32
  }
  func.func @transform_2(%arg0: i32) -> (i32, i32, i32, i32) {
    %c2_i32 = arith.constant 2 : i32
    %c0_i32 = arith.constant 0 : i32
    %c0_i32_0 = arith.constant 0 : i32
    %c0_i32_1 = arith.constant 0 : i32
    return %c2_i32, %arg0, %c0_i32, %c0_i32_0 : i32, i32, i32, i32
  }
  func.func @transform_3(%arg0: i32) -> (i32, i32, i32, i32) {
    %c1_i32 = arith.constant 1 : i32
    %c0_i32 = arith.constant 0 : i32
    %c0_i32_0 = arith.constant 0 : i32
    %c0_i32_1 = arith.constant 0 : i32
    return %c1_i32, %arg0, %c0_i32, %c0_i32_0 : i32, i32, i32, i32
  }
  func.func @transform_4(%arg0: i32) -> (i32, i32) {
    %c0_i32 = arith.constant 0 : i32
    %c0_i32_0 = arith.constant 0 : i32
    %c0_i32_1 = arith.constant 0 : i32
    return %c0_i32, %c0_i32_0 : i32, i32
  }
  func.func @transform_5(%arg0: i32) -> (i32, i32) {
    %c0_i32 = arith.constant 0 : i32
    %c0_i32_0 = arith.constant 0 : i32
    %c0_i32_1 = arith.constant 0 : i32
    return %c0_i32, %c0_i32_0 : i32, i32
  }
  func.func @transform_6(%arg0: i32) -> (i32, i32) {
    %c0_i32 = arith.constant 0 : i32
    %c0_i32_0 = arith.constant 0 : i32
    %c0_i32_1 = arith.constant 0 : i32
    return %c0_i32, %c0_i32_0 : i32, i32
  }
  func.func @transform_7(%arg0: i32) -> (i32, i32) {
    %c0_i32 = arith.constant 0 : i32
    %c0_i32_0 = arith.constant 0 : i32
    %c0_i32_1 = arith.constant 0 : i32
    return %c0_i32, %c0_i32_0 : i32, i32
  }
  func.func @transform_8(%arg0: i32) -> (i32, i32) {
    %c0_i32 = arith.constant 0 : i32
    %c0_i32_0 = arith.constant 0 : i32
    %c0_i32_1 = arith.constant 0 : i32
    return %c0_i32, %c0_i32_0 : i32, i32
  }
  func.func @transform_9(%arg0: i32) -> (i32, i32) {
    %c0_i32 = arith.constant 0 : i32
    %c0_i32_0 = arith.constant 0 : i32
    %c0_i32_1 = arith.constant 0 : i32
    return %c0_i32, %c0_i32_0 : i32, i32
  }
  func.func @transform_10(%arg0: i32) -> (i32, i32) {
    %c0_i32 = arith.constant 0 : i32
    %c0_i32_0 = arith.constant 0 : i32
    return %arg0, %c0_i32 : i32, i32
  }
}

</mosaic_0001>

<bundles_post_ra>
// kernel: tpu_custom_call.1
= control target key start
LH: loop header
LB: loop body
LE: loop exit
PB: predicated region body
PF: predicated region fallthrough
CT: control target
= control target key end

     0   :  { %s1987_s0 = inlined_call_operand.hbm [shape: f32[5,2,8,32], index: 0, kind: input, shape index: {}]   ;;  %s1988_s1 = inlined_call_operand.hbm [shape: f32[5,2,8,32], index: 1, kind: input, shape index: {}]   ;;  %s1989_s2 = inlined_call_operand.hbm [shape: f32[5,2,8,32], index: 2, kind: input, shape index: {}]   ;;  %s1990_s3 = inlined_call_operand.hbm [shape: f32[5,2,8,32], index: 3, kind: input, shape index: {}]   ;;  %s1991_s4 = inlined_call_operand.hbm [shape: bf16[128,128], index: 4, kind: input, shape index: {}]   ;;  %s1992_s5 = inlined_call_operand.vmem [shape: f32[1,128], index: 5, kind: input, shape index: {}]   ;;  %s1993_s6 = inlined_call_operand.vmem [shape: f32[1,128], index: 6, kind: input, shape index: {}]   ;;  %s1994_s7 = inlined_call_operand.<no memory space> [shape: f32[1,1], index: 7, kind: input, shape index: {}]   ;;  %s1995_s8 = inlined_call_operand.hbm [shape: f32[256,128], index: 8, kind: input, shape index: {}]   ;;  %s1996_s9 = inlined_call_operand.vmem [shape: f32[1,128], index: 9, kind: input, shape index: {}]   ;;  %s1997_s10 = inlined_call_operand.hbm [shape: f32[2,128], index: 10, kind: output, shape index: {}]  }
   0x1   :  { %v15_v0 = vstv %s1994_s7 }
   0x2   :  { %16 = vst [vmem:[#allocation2] sm:$0x1] %v15_v0 }
   0x3   :  { %17 = vsyncpa [#allocation4], 0 }
   0x4   :  { %18 = vsyncpa [#allocation7], 0 }
   0x5   :  { %19 = vsyncpa [#allocation10], 0 }
   0x6   :  { %20 = vsyncpa [#allocation13], 0 }
   0x7   :  { %21 = vsyncpa [#allocation5], 0  ;;  %s40_s17 = scalar_lea.hbm %s1988_s1, 768  ;;  %s1671_s18 = smov [#allocation6]  }
   0x8   :  { %s41_s19 = sshll.u32 %s1671_s18, 4  ;;  %s1750_s22 = scalar_lea.hbm %s1990_s3, 256  ;;  %s42_s19 = int_to_ptr.vmem [resolvable:$true] %s41_s19 }
   0x9   :  { %s1519_s24 = scalar_lea.hbm %s1988_s1, 1024  ;;  %s1497_s27 = scalar_lea.hbm %s1988_s1, 1280 }
   0xa   :  { %p1496_p0 = scmp.ne.s32.totalorder %s40_s17, %s1519_s24  ;;  %p1498_p1 = scmp.lt.u32.totalorder %s40_s17, %s1988_s1 }
   0xb   :  { %p1499_p2 = scmp.lt.u32.totalorder %s1497_s27, %s1519_s24  ;;  %p1501_p4 = scmp.lt.u32.totalorder %s1519_s24, %s40_s17 }
   0xd   :  { %p1500_p3 = por %p1499_p2, %p1498_p1 }
   0xf   :  { %p1502_p5 = por %p1501_p4, %p1500_p3 }
  0x11   :  { %p1503_p6 = pnand %p1502_p5, %p1496_p0 }
  0x13   :  { %1506 = shalt.err (!%p1503_p6)
}
  0x14   :  { %s1507_s30 = scalar_lea.vmem %s42_s19, 256  ;;  %p1512_p8 = scmp.lt.s32.totalorder %s42_s19, %s42_s19 }
  0x15   :  { %p1508_p7 = scmp.ne.s32.totalorder %s42_s19, %s1507_s30  ;;  %p1513_p9 = scmp.lt.s32.totalorder %s1507_s30, %s1507_s30 }
  0x17   :  { %p1514_p10 = por %p1513_p9, %p1512_p8 }
  0x19   :  { %p1515_p11 = pnand %p1514_p10, %p1508_p7 }
  0x1b   :  { %1518 = shalt.err (!%p1515_p11)
}
  0x1c   :  { %s1672_s11 = smov 128   ;;  %s1673_s12 = smov 8  }
  0x1d   :  { %47 = dma.hbm_to_vmem [thread:$0]  %s40_s17, 256, %s42_s19, [#allocation7], %s1672_s11, %s1672_s11, %s1673_s12  }
  0x1e   :  { %s1674_s1 = smov [#allocation9]   ;;  %s1767_s16 = scalar_lea.hbm %s1987_s0, 1024 }
  0x1f   :  { %s67_s13 = sshll.u32 %s1674_s1, 4  ;;  %s1544_s21 = scalar_lea.hbm %s1990_s3, 512  ;;  %s68_s13 = int_to_ptr.vmem [resolvable:$true] %s67_s13 }
  0x20   :  { %p1521_p12 = scmp.ne.s32.totalorder %s1750_s22, %s1544_s21  ;;  %s1522_s24 = scalar_lea.hbm %s1990_s3, 1280 }
  0x21   :  { %p1523_p13 = scmp.lt.u32.totalorder %s1750_s22, %s1990_s3  ;;  %p1524_p0 = scmp.lt.u32.totalorder %s1522_s24, %s1544_s21 }
  0x22   :  { %p1526_p2 = scmp.lt.u32.totalorder %s1544_s21, %s1750_s22 }
  0x23   :  { %p1525_p1 = por %p1524_p0, %p1523_p13 }
  0x25   :  { %p1527_p3 = por %p1526_p2, %p1525_p1 }
  0x27   :  { %p1528_p4 = pnand %p1527_p3, %p1521_p12 }
  0x29   :  { %1531 = shalt.err (!%p1528_p4)
}
  0x2a   :  { %s1532_s17 = scalar_lea.vmem %s68_s13, 256  ;;  %p1537_p6 = scmp.lt.s32.totalorder %s68_s13, %s68_s13 }
  0x2b   :  { %p1533_p5 = scmp.ne.s32.totalorder %s68_s13, %s1532_s17  ;;  %p1538_p7 = scmp.lt.s32.totalorder %s1532_s17, %s1532_s17 }
  0x2d   :  { %p1539_p8 = por %p1538_p7, %p1537_p6 }
  0x2f   :  { %p1540_p9 = pnand %p1539_p8, %p1533_p5 }
  0x31   :  { %1543 = shalt.err (!%p1540_p9)
}
  0x32   :  { %73 = dma.hbm_to_vmem [thread:$0]  %s1750_s22, 256, %s68_s13, [#allocation10], %s1672_s11, %s1672_s11, %s1673_s12  }
  0x33   :  { %s1675_s3 = smov [#allocation3]   ;;  %s1788_s29 = scalar_lea.hbm %s1989_s2, 512 }
  0x34   :  { %s28_s19 = sshll.u32 %s1675_s3, 4  ;;  %s1569_s14 = scalar_lea.hbm %s1987_s0, 1280  ;;  %s29_s19 = int_to_ptr.vmem [resolvable:$true] %s28_s19 }
  0x35   :  { %p1546_p10 = scmp.ne.s32.totalorder %s1767_s16, %s1569_s14  ;;  %p1548_p11 = scmp.lt.u32.totalorder %s1767_s16, %s1987_s0 }
  0x36   :  { %p1549_p12 = scmp.lt.u32.totalorder %s1569_s14, %s1569_s14  ;;  %p1551_p0 = scmp.lt.u32.totalorder %s1569_s14, %s1767_s16 }
  0x38   :  { %p1550_p13 = por %p1549_p12, %p1548_p11 }
  0x3a   :  { %p1552_p1 = por %p1551_p0, %p1550_p13 }
  0x3c   :  { %p1553_p2 = pnand %p1552_p1, %p1546_p10 }
  0x3e   :  { %1556 = shalt.err (!%p1553_p2)
}
  0x3f   :  { %s1557_s22 = scalar_lea.vmem %s29_s19, 256  ;;  %p1562_p4 = scmp.lt.s32.totalorder %s29_s19, %s29_s19 }
  0x40   :  { %p1558_p3 = scmp.ne.s32.totalorder %s29_s19, %s1557_s22  ;;  %p1563_p5 = scmp.lt.s32.totalorder %s1557_s22, %s1557_s22 }
  0x42   :  { %p1564_p6 = por %p1563_p5, %p1562_p4 }
  0x44   :  { %p1565_p7 = pnand %p1564_p6, %p1558_p3 }
  0x46   :  { %1568 = shalt.err (!%p1565_p7)
}
  0x47   :  { %34 = dma.hbm_to_vmem [thread:$0]  %s1767_s16, 256, %s29_s19, [#allocation4], %s1672_s11, %s1672_s11, %s1673_s12  }
  0x48   :  { %s1676_s0 = smov [#allocation8]   ;;  %s1677_s20 = smov [#allocation11]  }
  0x49   :  { %s54_s13 = sshll.u32 %s1676_s0, 4  ;;  %s79_s21 = sshll.u32 %s1677_s20, 4  ;;  %s55_s13 = int_to_ptr.vmem [resolvable:$true] %s54_s13  ;;  %s80_s21 = int_to_ptr.vmem [resolvable:$true] %s79_s21 }
  0x4a   :  { %s1594_s24 = scalar_lea.hbm %s1989_s2, 768  ;;  %s1572_s17 = scalar_lea.hbm %s1989_s2, 1280 }
  0x4b   :  { %p1571_p8 = scmp.ne.s32.totalorder %s1788_s29, %s1594_s24  ;;  %p1573_p9 = scmp.lt.u32.totalorder %s1788_s29, %s1989_s2 }
  0x4c   :  { %p1574_p10 = scmp.lt.u32.totalorder %s1572_s17, %s1594_s24  ;;  %p1576_p12 = scmp.lt.u32.totalorder %s1594_s24, %s1788_s29 }
  0x4e   :  { %p1575_p11 = por %p1574_p10, %p1573_p9 }
  0x50   :  { %p1577_p13 = por %p1576_p12, %p1575_p11 }
  0x52   :  { %p1578_p0 = pnand %p1577_p13, %p1571_p8 }
  0x54   :  { %1581 = shalt.err (!%p1578_p0)
}
  0x55   :  { %s1582_s16 = scalar_lea.vmem %s55_s13, 256  ;;  %p1587_p2 = scmp.lt.s32.totalorder %s55_s13, %s55_s13 }
  0x56   :  { %p1583_p1 = scmp.ne.s32.totalorder %s55_s13, %s1582_s16  ;;  %p1588_p3 = scmp.lt.s32.totalorder %s1582_s16, %s1582_s16 }
  0x58   :  { %p1589_p4 = por %p1588_p3, %p1587_p2 }
  0x5a   :  { %p1590_p5 = pnand %p1589_p4, %p1583_p1 }
  0x5c   :  { %1593 = shalt.err (!%p1590_p5)
}
  0x5d   :  { %60 = dma.hbm_to_vmem [thread:$0]  %s1788_s29, 256, %s55_s13, [#allocation7], %s1672_s11, %s1672_s11, %s1673_s12  }
  0x5e   :  { %s1595_s28 = scalar_lea.hbm %s1991_s4, 1024 }
  0x5f   :  { %p1596_p6 = scmp.ne.s32.totalorder %s1991_s4, %s1595_s28  ;;  %p1599_p7 = scmp.lt.u32.totalorder %s1595_s28, %s1991_s4 }
  0x61   :  { %p1601_p8 = pnand %p1599_p7, %p1596_p6 }
  0x63   :  { %1604 = shalt.err (!%p1601_p8)
}
  0x64   :  { %s1605_s18 = scalar_lea.vmem %s80_s21, 1024  ;;  %p1610_p10 = scmp.lt.s32.totalorder %s80_s21, %s80_s21 }
  0x65   :  { %p1606_p9 = scmp.ne.s32.totalorder %s80_s21, %s1605_s18  ;;  %p1611_p11 = scmp.lt.s32.totalorder %s1605_s18, %s1605_s18 }
  0x67   :  { %p1612_p12 = por %p1611_p11, %p1610_p10 }
  0x69   :  { %p1613_p13 = pnand %p1612_p12, %p1606_p9 }
  0x6b   :  { %1616 = shalt.err (!%p1613_p13)
}
  0x6c   :  { %s1678_s29 = smov 64   ;;  %s1679_s22 = smov 4  }
  0x6d   :  { %85 = dma.hbm_to_vmem [thread:$0]  %s1991_s4, 1024, %s80_s21, [#allocation10], %s1678_s29, %s1678_s29, %s1679_s22  }
  0x6e   :  { %s1680_s20 = smov [#allocation12]   ;;  %s1617_s25 = scalar_lea.hbm %s1995_s8, 4096 }
  0x6f   :  { %s97_s23 = sshll.u32 %s1680_s20, 4  ;;  %p1618_p0 = scmp.ne.s32.totalorder %s1995_s8, %s1617_s25  ;;  %s98_s23 = int_to_ptr.vmem [resolvable:$true] %s97_s23 }
  0x70   :  { %p1621_p1 = scmp.lt.u32.totalorder %s1617_s25, %s1995_s8 }
  0x72   :  { %p1623_p2 = pnand %p1621_p1, %p1618_p0 }
  0x74   :  { %1626 = shalt.err (!%p1623_p2)
}
  0x75   :  { %s1627_s16 = scalar_lea.vmem %s98_s23, 4096  ;;  %p1632_p4 = scmp.lt.s32.totalorder %s98_s23, %s98_s23 }
  0x76   :  { %p1628_p3 = scmp.ne.s32.totalorder %s98_s23, %s1627_s16  ;;  %p1633_p5 = scmp.lt.s32.totalorder %s1627_s16, %s1627_s16 }
  0x78   :  { %p1634_p6 = por %p1633_p5, %p1632_p4 }
  0x7a   :  { %p1635_p7 = pnand %p1634_p6, %p1628_p3 }
  0x7c   :  { %1638 = shalt.err (!%p1635_p7)
}
  0x7d   :  { %103 = dma.hbm_to_vmem [thread:$0]  %s1995_s8, 4096, %s98_s23, [#allocation13], %s1672_s11, %s1672_s11, %s1673_s12  }
  0x7e   :  { %1661 = dma.done.wait [#allocation4], 256  }
  0x7f   :  { %1662 = vsyncadd [#allocation4], 4294967040 }
  0x80   :  { %1663 = dma.done.wait [#allocation7], 512  }
  0x81   :  { %1664 = vsyncadd [#allocation7], 4294966784 }
  0x82   :  { %1665 = dma.done.wait [#allocation10], 1280  }
  0x83   :  { %1666 = vsyncadd [#allocation10], 4294966016 }
  0x84   :  { %1667 = dma.done.wait [#allocation13], 4096  }
  0x85   :  { %1668 = vsyncadd [#allocation13], 4294963200  ;;  %v1681_v1 = vmov 0.0   ;;  %vm1682_vm0 = vmmov 0   ;;  %v1471_v2 = vld [vmem:[#allocation11 + $0x10] sm:$0xff]   ;;  %v1472_v3 = vld [vmem:[#allocation11] sm:$0xff]  }
  0x86   :  { %1286 = vmatprep.subr.bf16.mxu0 %v1681_v1  ;;  %1294 = vmatprep.subr.bf16.mxu1 %v1681_v1  ;;  %v1473_v4 = vld [vmem:[#allocation11 + $0x18] sm:$0xff]   ;;  %v1474_v5 = vld [vmem:[#allocation11 + $0x8] sm:$0xff]   ;;  %v1854_v6 = vld [vmem:[#allocation6] sm:$0xff]  ;;  %vm155_vm1 = vcmask 261120   ;;  %v1683_v52 = vmov 0   ;;  %vm415_vm2 = vcmask 7168  }
  0x87   :  { %1290 = vmatprep.mubr.msk.bf16.mxu0 %vm1682_vm0, %v1681_v1  ;;  %1298 = vmatprep.mubr.msk.bf16.mxu1 %vm1682_vm0, %v1681_v1  ;;  %v1856_v7 = vld [vmem:[#allocation6 + $0x8] sm:$0xff]  ;;  %v1858_v8 = vld [vmem:[#allocation3] sm:$0xff]  ;;  %v1862_v10 = vld [vmem:[#allocation3 + $0x8] sm:$0xff]  ;;  %vm491_vm3 = vcmask 1041409   ;;  %vm1179_vm4 = vcmask 1041408   ;;  %s1685_s19 = smov [#allocation14]  }
  0x88   :  { %1287 = vmatpush3.bf16.msra.mxu0 %v1471_v2  ;;  %1295 = vmatpush3.bf16.msra.mxu1 %v1472_v3  ;;  %v138_v9 = vpack.c.bf16 %v1856_v7, %v1854_v6  ;;  %v133_v11 = vpack.c.bf16 %v1862_v10, %v1858_v8  ;;  %v1475_v12 = vld [vmem:[#allocation11 + $0x20] sm:$0xff]   ;;  %v1476_v13 = vld [vmem:[#allocation11 + $0x30] sm:$0xff]   ;;  %v1477_v14 = vld [vmem:[#allocation11 + $0x28] sm:$0xff]   ;;  %s1198_s28 = sshll.u32 %s1685_s19, 4  ;;  %s1199_s28 = int_to_ptr.vmem [resolvable:$true] %s1198_s28 }
  0x89   :  { %1288 = vmatprep.subr.bf16.mxu0 %v1681_v1  ;;  %1296 = vmatprep.subr.bf16.mxu1 %v1681_v1  ;;  %v1870_v15 = vld [vmem:[#allocation8] sm:$0xff]  ;;  %v1872_v16 = vld [vmem:[#allocation8 + $0x8] sm:$0xff]  ;;  %v1478_v17 = vld [vmem:[#allocation11 + $0x38] sm:$0xff]   ;;  %p1644_p9 = scmp.lt.s32.totalorder %s1199_s28, %s1199_s28 }
  0x8a   :  { %v1875_v18 = vld [vmem:[#allocation9] sm:$0xff]  ;;  %v1877_v19 = vld [vmem:[#allocation9 + $0x8] sm:$0xff]  ;;  %v256_v20 = vpack.c.bf16 %v1872_v16, %v1870_v15  ;;  %1469 = vset.pattern.permute.xlu1 %v1683_v52  ;;  %1470 = vset.pattern.permute.xlu0 %v1683_v52 }
  0x8b   :  { %v319_v21 = vpack.c.bf16 %v1877_v19, %v1875_v18  ;;  %v1222_v36 = vld [vmem:[%s1992_s5] ss:$0 sm:$0xff] }
  0x8c   :  { %1289 = vmatpush3.bf16.msra.mxu0 %v1473_v4  ;;  %1297 = vmatpush3.bf16.msra.mxu1 %v1474_v5  ;;  %v1223_v47 = vld [vmem:[%s1993_s6] ss:$0 sm:$0xff] }
  0x8d   :  { %1302 = vmatprep.subr.bf16.mxu0 %v1681_v1  ;;  %1310 = vmatprep.subr.bf16.mxu1 %v1681_v1  ;;  %v1224_v53 = vld [vmem:[#allocation2] ss:$0 sm:$0xff] }
  0x8f   :  { %1291 = vmatmul.mubr.msk.bf16.vlgmr.msra.gmra.mrb[0].mxu0 %vm155_vm1, %v138_v9  ;;  %1299 = vmatmul.mubr.msk.bf16.vlgmr.msra.gmra.mrb[0].mxu1 %vm155_vm1, %v133_v11 }
  0x90   :  { %1303 = vmatpush3.bf16.msra.mxu0 %v1475_v12  ;;  %1311 = vmatpush3.bf16.msra.mxu1 %v1476_v13 }
  0x91   :  { %1304 = vmatprep.subr.bf16.mxu0 %v1681_v1  ;;  %1312 = vmatprep.subr.bf16.mxu1 %v1681_v1 }
  0x92   :  { %1306 = vmatprep.mubr.msk.bf16.mxu0 %vm1682_vm0, %v1681_v1  ;;  %1314 = vmatprep.mubr.msk.bf16.mxu1 %vm1682_vm0, %v1681_v1 }
  0x94   :  { %1305 = vmatpush3.bf16.msra.mxu0 %v1477_v14  ;;  %1313 = vmatpush3.bf16.msra.mxu1 %v1478_v17 }
  0x97   :  { %1307 = vmatmul.mubr.msk.bf16.vlgmr.msra.gmra.mrb[4].mxu0 %vm155_vm1, %v256_v20  ;;  %1315 = vmatmul.mubr.msk.bf16.vlgmr.msra.gmra.mrb[4].mxu1 %vm155_vm1, %v319_v21 }
  0x98   :  { %1326 = vmatprep.mubr.msk.f32.mxu0 %vm1682_vm0, %v1681_v1  ;;  %1337 = vmatprep.mubr.msk.f32.mxu1 %vm1682_vm0, %v1681_v1 }
 0x162   :  { %v193_v22 = vpop.f32.mrb[0].mxu0  ;;  %v249_v23 = vpop.f32.mrb[0].mxu1 }
 0x163   :  { %v1292_v24 = vpop.f32.mrb[1].mxu0  ;;  %v250_v25 = vadd.f32 %v249_v23, %v193_v22  ;;  %v1300_v26 = vpop.f32.mrb[1].mxu1 }
 0x164   :  { %v196_v27 = vpop.f32.mrb[2].mxu0  ;;  %v252_v28 = vpop.f32.mrb[2].mxu1 }
 0x165   :  { %v1293_v29 = vpop.f32.mrb[3].mxu0  ;;  %v253_v30 = vadd.f32 %v252_v28, %v196_v27  ;;  %v1301_v31 = vpop.f32.mrb[3].mxu1 }
 0x16a   :  { %v310_v32 = vpop.f32.mrb[4].mxu0  ;;  %v373_v34 = vpop.f32.mrb[4].mxu1 }
 0x16b   :  { %v317_v33 = vadd.f32 %v310_v32, %v250_v25  ;;  %v1308_v35 = vpop.f32.mrb[5].mxu0  ;;  %v1316_v37 = vpop.f32.mrb[5].mxu1 }
 0x16c   :  { %v313_v38 = vpop.f32.mrb[6].mxu0  ;;  %v376_v41 = vpop.f32.mrb[6].mxu1 }
 0x16d   :  { %v380_v39 = vadd.f32 %v373_v34, %v317_v33  ;;  %v318_v40 = vadd.f32 %v313_v38, %v253_v30  ;;  %v1309_v42 = vpop.f32.mrb[7].mxu0  ;;  %v1317_v43 = vpop.f32.mrb[7].mxu1 }
 0x16e   :  { %v485_v42 = vld [vmem:[#allocation12 + $0x88] sm:$0xff] }
 0x16f   :  { %v389_v44 = vadd.f32 %v1222_v36, %v380_v39  ;;  %v381_v45 = vadd.f32 %v376_v41, %v318_v40  ;;  %v484_v41 = vld [vmem:[#allocation12 + $0x80] sm:$0xff] }
 0x170   :  { %v1407_v43 = vpack.c.bf16 %v485_v42, %v484_v41 }
 0x171   :  { %1479 = vtanh.f32 %v389_v44  ;;  %v390_v46 = vadd.f32 %v1222_v36, %v381_v45  ;;  %v1684_v44 = vmov 0.0|0.0   ;;  %v486_v45 = vld [vmem:[#allocation12 + $0x90] sm:$0xff] }
 0x172   :  { %1406 = vmatprep.subr.bf16.mxu0 %v1684_v44  ;;  %1412 = vmatprep.subr.bf16.mxu1 %v1684_v44 }
 0x173   :  { %1481 = vtanh.f32 %v390_v46  ;;  %1408 = vmatpush3.bf16.msra.mxu0 %v1407_v43  ;;  %v487_v46 = vld [vmem:[#allocation12 + $0x98] sm:$0xff] }
 0x174   :  { %1409 = vmatprep.subr.bf16.mxu0 %v1684_v44 }
 0x17b   :  { %v1480_v48 = vpop.eup %1479 }
 0x17c   :  { %v400_v49 = vmul.f32 %v1480_v48, %v1223_v47  ;;  %v490_v48 = vrot.slane %v1862_v10, 7 }
 0x17d   :  { %v1482_v50 = vpop.eup %1481 }
 0x17e   :  { %402 = vadd.xlane.f32.xlu0 %v400_v49  ;;  %v401_v51 = vmul.f32 %v1482_v50, %v1223_v47  ;;  %v1410_v47 = vpack.c.bf16 %v487_v46, %v486_v45  ;;  %v480_v49 = vld [vmem:[#allocation12] sm:$0xff]  ;;  %v481_v50 = vld [vmem:[#allocation12 + $0x8] sm:$0xff] }
 0x17f   :  { %v1413_v52 = vpack.c.bf16 %v481_v50, %v480_v49  ;;  %v736_v46 = vld [vmem:[#allocation12 + $0xa0] sm:$0xff] }
 0x180   :  { %1411 = vmatpush3.bf16.msra.mxu0 %v1410_v47 }
 0x181   :  { %1418 = vmatprep.subr.bf16.mxu0 %v1684_v44  ;;  %1414 = vmatpush3.bf16.msra.mxu1 %v1413_v52  ;;  %v833_v52 = vld [vmem:[#allocation12 + $0x40] sm:$0xff] }
 0x182   :  { %404 = vadd.xlane.f32.xlu0 %v401_v51  ;;  %v656_v51 = vld [vmem:[#allocation12 + $0x20] sm:$0xff]  ;;  %1415 = vmatprep.subr.bf16.mxu1 %v1684_v44 }
 0x20b   :  { %v403_v54 = vpop.xlane.xlu0 %402 }
 0x20c   :  { %v413_v55 = vadd.f32 %v1224_v53, %v403_v54  ;;  %v492_v54 = vsel %vm491_vm3, %v490_v48, %v1858_v8 }
 0x20d   :  { %1327 = vmatmul.mubr.msk.f32.vlgmr.msra.gmra.mrb[8].mxu0 %vm155_vm1, %v492_v54 }
 0x20e   :  { %v416_v56 = vsel %vm415_vm2, %v413_v55, -inf  ;;  %1348 = vmatprep.mubr.msk.f32.mxu0 %vm1682_vm0, %v1681_v1 }
 0x20f   :  { %v417_v57 = vrot.slane %v416_v56, 4  ;;  %v405_v58 = vpop.xlane.xlu0 %404 }
 0x210   :  { %v414_v59 = vadd.f32 %v1224_v53, %v405_v58  ;;  %v657_v53 = vld [vmem:[#allocation12 + $0x28] sm:$0xff]  ;;  %v658_v58 = vld [vmem:[#allocation12 + $0x30] sm:$0xff] }
 0x211   :  { %v418_v60 = vmax.f32 %v416_v56, %v417_v57  ;;  %v482_v56 = vld [vmem:[#allocation12 + $0x10] sm:$0xff]  ;;  %v483_v57 = vld [vmem:[#allocation12 + $0x18] sm:$0xff] }
 0x212   :  { %v423_v61 = vsel %vm415_vm2, %v414_v59, -inf }
 0x213   :  { %v419_v62 = vrot.slane %v418_v60, 2  ;;  %v424_v63 = vrot.slane %v423_v61, 4 }
 0x215   :  { %v420_v0 = vmax.f32 %v418_v60, %v419_v62  ;;  %v425_v2 = vmax.f32 %v423_v61, %v424_v63  ;;  %v659_v60 = vld [vmem:[#allocation12 + $0x38] sm:$0xff] }
 0x216   :  { %v1422_v61 = vpack.c.bf16 %v659_v60, %v658_v58 }
 0x217   :  { %v421_v3 = vrot.slane %v420_v0, 1  ;;  %v426_v4 = vrot.slane %v425_v2, 2 }
 0x219   :  { %v422_v5 = vmax.f32 %v420_v0, %v421_v3  ;;  %v427_v9 = vmax.f32 %v425_v2, %v426_v4 }
 0x21b   :  { %v430_v11 = vsub.f32 %v413_v55, %v422_v5  ;;  %v428_v12 = vrot.slane %v427_v9, 1  ;;  %v1419_v55 = vpack.c.bf16 %v657_v53, %v656_v51  ;;  %v737_v51 = vld [vmem:[#allocation12 + $0xa8] sm:$0xff] }
 0x21c   :  { %v834_v53 = vld [vmem:[#allocation12 + $0x48] sm:$0xff]  ;;  %v1425_v60 = vpack.c.bf16 %v737_v51, %v736_v46  ;;  %v1096_v51 = vrot.slane %v1877_v19, 7 }
 0x21d   :  { %v432_v13 = vmul.f32 1.442695, %v430_v11  ;;  %v429_v14 = vmax.f32 %v427_v9, %v428_v12  ;;  %1420 = vmatpush3.bf16.msra.mxu0 %v1419_v55 }
 0x21e   :  { %1421 = vmatprep.subr.bf16.mxu0 %v1684_v44 }
 0x21f   :  { %1483 = vpow2.f32 %v432_v13  ;;  %v431_v17 = vsub.f32 %v414_v59, %v429_v14  ;;  %v1416_v59 = vpack.c.bf16 %v483_v57, %v482_v56 }
 0x221   :  { %v434_v20 = vmul.f32 1.442695, %v431_v17  ;;  %1417 = vmatpush3.bf16.msra.mxu1 %v1416_v59  ;;  %1423 = vmatpush3.bf16.msra.mxu0 %v1422_v61  ;;  %v1431_v61 = vpack.c.bf16 %v834_v53, %v833_v52 }
 0x222   :  { %1424 = vmatprep.subr.bf16.mxu1 %v1684_v44  ;;  %1430 = vmatprep.subr.bf16.mxu0 %v1684_v44 }
 0x223   :  { %1485 = vpow2.f32 %v434_v20 }
 0x229   :  { %v1484_v21 = vpop.eup %1483 }
 0x22a   :  { %v436_v22 = vsel %vm415_vm2, %v1484_v21, 0.0 }
 0x22b   :  { %v437_v23 = vrot.slane %v436_v22, 4 }
 0x22d   :  { %v1486_v24 = vpop.eup %1485  ;;  %v438_v25 = vadd.f32 %v437_v23, %v436_v22 }
 0x22e   :  { %v443_v26 = vsel %vm415_vm2, %v1486_v24, 0.0 }
 0x22f   :  { %v439_v27 = vrot.slane %v438_v25, 2  ;;  %v444_v28 = vrot.slane %v443_v26, 4 }
 0x231   :  { %v440_v29 = vadd.f32 %v439_v27, %v438_v25  ;;  %v445_v30 = vadd.f32 %v444_v28, %v443_v26 }
 0x233   :  { %v446_v31 = vrot.slane %v445_v30, 2  ;;  %v441_v32 = vrot.slane %v440_v29, 1 }
 0x235   :  { %v442_v33 = vadd.f32 %v441_v32, %v440_v29  ;;  %v447_v34 = vadd.f32 %v446_v31, %v445_v30 }
 0x237   :  { %1487 = vrcp.f32 %v442_v33  ;;  %v448_v35 = vrot.slane %v447_v34, 1 }
 0x239   :  { %v449_v36 = vadd.f32 %v448_v35, %v447_v34 }
 0x23b   :  { %1489 = vrcp.f32 %v449_v36 }
 0x241   :  { %v1488_v37 = vpop.eup %1487 }
 0x242   :  { %v451_v38 = vmul.f32 %v1488_v37, %v1484_v21 }
 0x244   :  { %456 = vperm.xlu1 %1469, %v451_v38  }
 0x245   :  { %v1490_v39 = vpop.eup %1489 }
 0x246   :  { %v453_v40 = vmul.f32 %v1490_v39, %v1486_v24 }
 0x248   :  { %461 = vperm.xlu1 %1469, %v453_v40  }
 0x2c3   :  { %v457_v62 = vpop.permute.xlu1 %456 }
 0x2c4   :  { %v464_v63 = vmul.f32 %v457_v62, %v1858_v8  ;;  %v640_v0 = vmul.f32 %v457_v62, %v1854_v6  ;;  %v817_v2 = vmul.f32 %v457_v62, %v1870_v15  ;;  %v994_v13 = vmul.f32 %v457_v62, %v1875_v18 }
 0x2c6   :  { %v466_v3 = vsel %vm155_vm1, %v464_v63, 0.0  ;;  %v642_v4 = vsel %vm155_vm1, %v640_v0, 0.0  ;;  %v819_v5 = vsel %vm155_vm1, %v817_v2, 0.0  ;;  %v996_v33 = vsel %vm155_vm1, %v994_v13, 0.0 }
 0x2c7   :  { %v467_v9 = vrot.slane %v466_v3, 4  ;;  %v643_v11 = vrot.slane %v642_v4, 4  ;;  %v462_v12 = vpop.permute.xlu1 %461  ;;  %v820_v22 = vrot.slane %v819_v5, 4  ;;  %v997_v45 = vrot.slane %v996_v33, 4 }
 0x2c8   :  { %v465_v14 = vmul.f32 %v462_v12, %v1862_v10  ;;  %v641_v17 = vmul.f32 %v462_v12, %v1856_v7  ;;  %v818_v8 = vmul.f32 %v462_v12, %v1872_v16  ;;  %v995_v23 = vmul.f32 %v462_v12, %v1877_v19 }
 0x2c9   :  { %v468_v20 = vadd.f32 %v467_v9, %v466_v3  ;;  %v644_v21 = vadd.f32 %v643_v11, %v642_v4  ;;  %v821_v32 = vadd.f32 %v820_v22, %v819_v5  ;;  %v998_v59 = vadd.f32 %v997_v45, %v996_v33  ;;  %v738_v3 = vld [vmem:[#allocation12 + $0xb0] sm:$0xff]  ;;  %v739_v4 = vld [vmem:[#allocation12 + $0xb8] sm:$0xff] }
 0x2ca   :  { %v473_v24 = vsel %vm155_vm1, %v465_v14, 0.0  ;;  %v649_v25 = vsel %vm155_vm1, %v641_v17, 0.0  ;;  %v826_v26 = vsel %vm155_vm1, %v818_v8, 0.0  ;;  %v1003_v34 = vsel %vm155_vm1, %v995_v23, 0.0  ;;  %v835_v5 = vld [vmem:[#allocation12 + $0x50] sm:$0xff]  ;;  %v836_v9 = vld [vmem:[#allocation12 + $0x58] sm:$0xff] }
 0x2cb   :  { %v469_v27 = vrot.slane %v468_v20, 2  ;;  %v645_v28 = vrot.slane %v644_v21, 2  ;;  %v474_v29 = vrot.slane %v473_v24, 4  ;;  %v650_v30 = vrot.slane %v649_v25, 4  ;;  %v913_v23 = vld [vmem:[#allocation12 + $0xc0] sm:$0xff]  ;;  %v916_v33 = vld [vmem:[#allocation12 + $0xd8] sm:$0xff] }
 0x2cc   :  { %v827_v10 = vrot.slane %v826_v26, 4  ;;  %v1004_v42 = vrot.slane %v1003_v34, 4  ;;  %v822_v43 = vrot.slane %v821_v32, 2  ;;  %v742_v17 = vrot.slane %v1856_v7, 7 }
 0x2cd   :  { %v470_v31 = vadd.f32 %v469_v27, %v468_v20  ;;  %v646_v35 = vadd.f32 %v645_v28, %v644_v21  ;;  %v475_v36 = vadd.f32 %v474_v29, %v473_v24  ;;  %v651_v37 = vadd.f32 %v650_v30, %v649_v25  ;;  %v914_v24 = vld [vmem:[#allocation12 + $0xc8] sm:$0xff]  ;;  %v1010_v25 = vld [vmem:[#allocation12 + $0x60] sm:$0xff] }
 0x2ce   :  { %v828_v38 = vadd.f32 %v827_v10, %v826_v26  ;;  %v1005_v55 = vadd.f32 %v1004_v42, %v1003_v34  ;;  %v823_v58 = vadd.f32 %v822_v43, %v821_v32  ;;  %v999_v8 = vrot.slane %v998_v59, 2  ;;  %v1011_v26 = vld [vmem:[#allocation12 + $0x68] sm:$0xff]  ;;  %v915_v32 = vld [vmem:[#allocation12 + $0xd0] sm:$0xff] }
 0x2cf   :  { %v476_v39 = vrot.slane %v475_v36, 2  ;;  %v652_v40 = vrot.slane %v651_v37, 2  ;;  %v471_v49 = vrot.slane %v470_v31, 1  ;;  %v647_v50 = vrot.slane %v646_v35, 1  ;;  %v1012_v34 = vld [vmem:[#allocation12 + $0x70] sm:$0xff]  ;;  %v1091_v42 = vld [vmem:[#allocation12 + $0xe8] sm:$0xff] }
 0x2d0   :  { %v829_v41 = vrot.slane %v828_v38, 2  ;;  %v1006_v11 = vrot.slane %v1005_v55, 2  ;;  %v1428_v20 = vpack.c.bf16 %v739_v4, %v738_v3  ;;  %v1434_v21 = vpack.c.bf16 %v836_v9, %v835_v5  ;;  %v1233_v9 = vld [vmem:[%s1996_s9] ss:$0 sm:$0xff]  ;;  %s1639_s9 = scalar_lea.vmem %s1199_s28, 32 }
 0x2d1   :  { %v477_v47 = vadd.f32 %v476_v39, %v475_v36  ;;  %v653_v48 = vadd.f32 %v652_v40, %v651_v37  ;;  %v472_v62 = vadd.f32 %v471_v49, %v470_v31  ;;  %v648_v0 = vadd.f32 %v647_v50, %v646_v35  ;;  %v1013_v35 = vld [vmem:[#allocation12 + $0x78] sm:$0xff]  ;;  %p1640_p8 = scmp.ne.s32.totalorder %s1199_s28, %s1639_s9  ;;  %p1645_p10 = scmp.lt.s32.totalorder %s1639_s9, %s1639_s9 }
 0x2d2   :  { %v830_v54 = vadd.f32 %v829_v41, %v828_v38  ;;  %v824_v22 = vrot.slane %v823_v58, 1  ;;  %v1007_v27 = vadd.f32 %v1006_v11, %v1005_v55  ;;  %v743_v28 = vsel %vm491_vm3, %v742_v17, %v1854_v6  ;;  %v1090_v41 = vld [vmem:[#allocation12 + $0xe0] sm:$0xff] }
 0x2d3   :  { %v478_v56 = vrot.slane %v477_v47, 1  ;;  %v654_v57 = vrot.slane %v653_v48, 1  ;;  %v1437_v29 = vpack.c.bf16 %v914_v24, %v913_v23  ;;  %v1000_v30 = vadd.f32 %v999_v8, %v998_v59  ;;  %p1646_p11 = por %p1645_p10, %p1644_p9 }
 0x2d4   :  { %v831_v14 = vrot.slane %v830_v54, 1  ;;  %v825_v10 = vadd.f32 %v824_v22, %v823_v58  ;;  %v1443_v31 = vpack.c.bf16 %v1011_v26, %v1010_v25  ;;  %v1008_v37 = vrot.slane %v1007_v27, 1 }
 0x2d5   :  { %v479_v63 = vadd.f32 %v478_v56, %v477_v47  ;;  %v655_v2 = vadd.f32 %v654_v57, %v653_v48  ;;  %v1440_v6 = vpack.c.bf16 %v916_v33, %v915_v32  ;;  %v1446_v38 = vpack.c.bf16 %v1013_v35, %v1012_v34  ;;  %v1092_v47 = vld [vmem:[#allocation12 + $0xf0] sm:$0xff]  ;;  %v1093_v48 = vld [vmem:[#allocation12 + $0xf8] sm:$0xff]  ;;  %p1647_p12 = pnand %p1646_p11, %p1640_p8 }
 0x2d6   :  { %v832_v7 = vadd.f32 %v831_v14, %v830_v54  ;;  %v919_v39 = vrot.slane %v1872_v16, 7  ;;  %v1001_v40 = vrot.slane %v1000_v30, 1  ;;  %v1009_v43 = vadd.f32 %v1008_v37, %v1007_v27 }
 0x2d7   :  { %v567_v12 = vsel %vm491_vm3, %v479_v63, %v472_v62  ;;  %v662_v13 = vsel %vm491_vm3, %v655_v2, %v648_v0  ;;  %v1449_v46 = vpack.c.bf16 %v1091_v42, %v1090_v41  ;;  %v1452_v50 = vpack.c.bf16 %v1093_v48, %v1092_v47 }
 0x2d8   :  { %1338 = vmatmul.mubr.msk.f32.vlgmr.msra.gmra.mrb[8].mxu1 %vm155_vm1, %v567_v12  ;;  %1349 = vmatmul.mubr.msk.f32.vlgmr.msra.gmra.mrb[10].mxu0 %vm155_vm1, %v662_v13  ;;  %v839_v36 = vsel %vm491_vm3, %v832_v7, %v825_v10  ;;  %v920_v45 = vsel %vm491_vm3, %v919_v39, %v1870_v15  ;;  %v1002_v16 = vadd.f32 %v1001_v40, %v1000_v30 }
 0x2d9   :  { %1426 = vmatpush3.bf16.msra.mxu1 %v1425_v60  ;;  %1432 = vmatpush3.bf16.msra.mxu0 %v1431_v61  ;;  %v1097_v15 = vsel %vm491_vm3, %v1096_v51, %v1875_v18 }
 0x2da   :  { %1427 = vmatprep.subr.bf16.mxu1 %v1684_v44  ;;  %1433 = vmatprep.subr.bf16.mxu0 %v1684_v44  ;;  %v1016_v49 = vsel %vm491_vm3, %v1009_v43, %v1002_v16 }
 0x2db   :  { %1359 = vmatprep.mubr.msk.f32.mxu1 %vm1682_vm0, %v1681_v1  ;;  %1370 = vmatprep.mubr.msk.f32.mxu0 %vm1682_vm0, %v1681_v1 }
 0x2dd   :  { %1429 = vmatpush3.bf16.msra.mxu1 %v1428_v20  ;;  %1435 = vmatpush3.bf16.msra.mxu0 %v1434_v21 }
 0x2de   :  { %1436 = vmatprep.subr.bf16.mxu1 %v1684_v44  ;;  %1442 = vmatprep.subr.bf16.mxu0 %v1684_v44 }
 0x2e0   :  { %1360 = vmatmul.mubr.msk.f32.vlgmr.msra.gmra.mrb[10].mxu1 %vm155_vm1, %v743_v28  ;;  %1371 = vmatmul.mubr.msk.f32.vlgmr.msra.gmra.mrb[12].mxu0 %vm155_vm1, %v839_v36  ;;  %v561_v52 = vpop.f32.mrb[8].mxu0 }
 0x2e1   :  { %1438 = vmatpush3.bf16.msra.mxu1 %v1437_v29  ;;  %1444 = vmatpush3.bf16.msra.mxu0 %v1443_v31  ;;  %v1328_v53 = vpop.f32.mrb[9].mxu0 }
 0x2e2   :  { %1439 = vmatprep.subr.bf16.mxu1 %v1684_v44  ;;  %1445 = vmatprep.subr.bf16.mxu0 %v1684_v44 }
 0x2e3   :  { %1381 = vmatprep.mubr.msk.f32.mxu1 %vm1682_vm0, %v1681_v1  ;;  %1392 = vmatprep.mubr.msk.f32.mxu0 %vm1682_vm0, %v1681_v1 }
 0x2e5   :  { %1441 = vmatpush3.bf16.msra.mxu1 %v1440_v6  ;;  %1447 = vmatpush3.bf16.msra.mxu0 %v1446_v38 }
 0x2e6   :  { %1448 = vmatprep.subr.bf16.mxu1 %v1684_v44 }
 0x2e8   :  { %1382 = vmatmul.mubr.msk.f32.vlgmr.msra.gmra.mrb[12].mxu1 %vm155_vm1, %v920_v45  ;;  %1393 = vmatmul.mubr.msk.f32.vlgmr.msra.gmra.mrb[14].mxu0 %vm155_vm1, %v1016_v49 }
 0x2e9   :  { %1450 = vmatpush3.bf16.msra.mxu1 %v1449_v46  ;;  %1403 = vmatprep.mubr.msk.f32.mxu1 %vm1682_vm0, %v1681_v1 }
 0x2ea   :  { %1451 = vmatprep.subr.bf16.mxu1 %v1684_v44 }
 0x2ed   :  { %1453 = vmatpush3.bf16.msra.mxu1 %v1452_v50 }
 0x2f0   :  { %1404 = vmatmul.mubr.msk.f32.vlgmr.msra.gmra.mrb[14].mxu1 %vm155_vm1, %v1097_v15 }
 0x3ab   :  { %v636_v54 = vpop.f32.mrb[8].mxu1  ;;  %v731_v55 = vpop.f32.mrb[10].mxu0 }
 0x3ac   :  { %v637_v56 = vadd.f32 %v636_v54, %v561_v52  ;;  %v1339_v57 = vpop.f32.mrb[9].mxu1  ;;  %v1350_v58 = vpop.f32.mrb[11].mxu0 }
 0x3ae   :  { %v735_v59 = vadd.f32 %v731_v55, %v637_v56 }
 0x3b3   :  { %v812_v60 = vpop.f32.mrb[10].mxu1  ;;  %v908_v1 = vpop.f32.mrb[12].mxu0 }
 0x3b4   :  { %v816_v61 = vadd.f32 %v812_v60, %v735_v59  ;;  %v1372_v19 = vpop.f32.mrb[13].mxu0  ;;  %v1361_v62 = vpop.f32.mrb[11].mxu1 }
 0x3b6   :  { %v912_v44 = vadd.f32 %v908_v1, %v816_v61 }
 0x3bb   :  { %v989_v63 = vpop.f32.mrb[12].mxu1  ;;  %v1085_v0 = vpop.f32.mrb[14].mxu0 }
 0x3bc   :  { %v993_v2 = vadd.f32 %v989_v63, %v912_v44  ;;  %v1394_v18 = vpop.f32.mrb[15].mxu0  ;;  %v1383_v3 = vpop.f32.mrb[13].mxu1 }
 0x3be   :  { %v1089_v4 = vadd.f32 %v1085_v0, %v993_v2 }
 0x3c3   :  { %v1166_v5 = vpop.f32.mrb[14].mxu1 }
 0x3c4   :  { %v1170_v11 = vadd.f32 %v1166_v5, %v1089_v4  ;;  %v1405_v12 = vpop.f32.mrb[15].mxu1 }
 0x3c6   :  { %v1178_v13 = vadd.f32 %v1233_v9, %v1170_v11 }
 0x3c8   :  { %v1180_v14 = vsel %vm1179_vm4, %v1178_v13, -inf }
 0x3c9   :  { %1181 = vmax.xlane.f32.xlu0 %v1180_v14 }
 0x456   :  { %v1182_v17 = vpop.xlane.xlu0 %1181 }
 0x457   :  { %v1183_v8 = vsub.f32 %v1178_v13, %v1182_v17 }
 0x459   :  { %v1184_v20 = vmul.f32 1.442695, %v1183_v8 }
 0x45b   :  { %1491 = vpow2.f32 %v1184_v20 }
 0x465   :  { %v1492_v21 = vpop.eup %1491 }
 0x466   :  { %v1186_v22 = vsel %vm1179_vm4, %v1492_v21, 0.0 }
 0x467   :  { %1187 = vadd.xlane.f32.xlu1 %v1186_v22 }
 0x4f4   :  { %v1188_v23 = vpop.xlane.xlu1 %1187 }
 0x4f5   :  { %1493 = vrcp.f32 %v1188_v23 }
 0x4ff   :  { %v1494_v24 = vpop.eup %1493 }
 0x500   :  { %v1190_v25 = vmul.f32 %v1494_v24, %v1492_v21 }
 0x502   :  { %1191 = vst [vmem:[#allocation14] sm:$0x3] %v1190_v25 }
 0x503   :  { %1650 = shalt.err (!%p1647_p12)
}
 0x504   :  { %s1651_s14 = scalar_lea.hbm %s1997_s10, 32 }
 0x505   :  { %p1652_p13 = scmp.ne.s32.totalorder %s1997_s10, %s1651_s14  ;;  %p1655_p0 = scmp.lt.u32.totalorder %s1651_s14, %s1997_s10 }
 0x507   :  { %p1657_p1 = pnand %p1655_p0, %p1652_p13 }
 0x509   :  { %1660 = shalt.err (!%p1657_p1)
}
 0x50a   :  { %1201 = dma.vmem_to_hbm [thread:$0]  %s1199_s28, 32, %s1997_s10, [#allocation5]  }
 0x50b   :  { %1669 = dma.done.wait [#allocation5], 32  }
 0x50c   :  { %1670 = vsyncadd [#allocation5], 4294967264 }
 0x50d   :  { %1205 = vsyncpa [#allocation4], 1 }
 0x50e   :  { %1206 = vsyncpa [#allocation7], 1 }
 0x50f   :  { %1207 = vsyncpa [#allocation10], 1 }
 0x510   :  { %1208 = vsyncpa [#allocation13], 1 }
 0x511   :  { %1209 = vsyncpa [#allocation5], 1 }

</bundles_post_ra>
